<compile_context>
chip_gen: v6e
topology: v6e:2x2x1
jax: 0.10.0
libtpu: 0.0.40
codegen_flags: <defaults>
</compile_context>

<pallas_src>
import jax
import jax.numpy as jnp
from jax.experimental import pallas as pl
from jax.experimental.pallas import tpu as pltpu


def fused_linear_kernel(x_ref, w_ref, b_ref, o_ref):
    # x: (tm, 30), w: (30, 10), b: (1, 10), o: (tm, 10)
    acc = jnp.dot(x_ref[...], w_ref[...], preferred_element_type=jnp.float32)
    o_ref[...] = (acc + b_ref[...]).astype(o_ref.dtype)


def prepare_params(w1, b1, w2, b2, dtype=jnp.float32):
    """One-time parameter prep (NOT in the forward path).

    w1: (50, 30) PyTorch layout, b1: (50,), w2: (10, 50), b2: (10,).
    Since there is no nonlinearity between the layers, fold them:
        W = w1.T @ w2.T   -> (30, 10)
        b = b1 @ w2.T + b2 -> (1, 10)
    """
    w_folded = (w1.T @ w2.T).astype(dtype)                 # (30, 10)
    b_folded = (b1 @ w2.T + b2).astype(dtype)[None, :]     # (1, 10)
    return w_folded, b_folded


def _choose_batch_tile(B, block_b):
    """Batch tile: multiple of 8 (sublane) or the full batch dim.

    For large batches, aim for >= 4 blocks so the parallel grid axis gives
    each v7x TensorCore at least 2 blocks and the auto-pipeline can overlap.
    """
    if B <= 8:
        return B  # block dim == full array dim is always legal
    target = max(8, min(block_b, pl.cdiv(B, 4)))
    tm = max(8, (target // 8) * 8)
    return min(tm, max(8, (B // 8) * 8))


def two_linear_forward(x, w_folded, b_folded, *, block_b=4096):
    """x: (B, 30) -> (B, 10), matching Net.forward semantics."""
    B, K = x.shape
    N = w_folded.shape[1]

    tm = _choose_batch_tile(B, block_b)
    grid = (pl.cdiv(B, tm),)  # ragged last block handled by Pallas (no jnp.pad)

    out = pl.pallas_call(
        fused_linear_kernel,
        out_shape=jax.ShapeDtypeStruct((B, N), x.dtype),
        grid=grid,
        in_specs=[
            pl.BlockSpec((tm, K), lambda i: (i, 0)),   # batch-tiled activations
            pl.BlockSpec((K, N), lambda i: (0, 0)),    # folded weight: VMEM-resident
            pl.BlockSpec((1, N), lambda i: (0, 0)),    # folded bias: VMEM-resident
        ],
        out_specs=pl.BlockSpec((tm, N), lambda i: (i, 0)),
        compiler_params=pltpu.CompilerParams(
            dimension_semantics=("parallel",),
        ),
    )(x, w_folded, b_folded)
    return out


if __name__ == "__main__":
    key = jax.random.PRNGKey(0)
    k_x, k_w1, k_b1, k_w2, k_b2 = jax.random.split(key, 5)

    B, IN, HID, OUT = 8, 30, 50, 10

    x = jax.random.normal(k_x, (B, IN), dtype=jnp.float32)
    # nn.Linear layouts: weight (out, in), bias (out,)
    w1 = jax.random.normal(k_w1, (HID, IN), dtype=jnp.float32) * 0.1
    b1 = jax.random.normal(k_b1, (HID,), dtype=jnp.float32) * 0.1
    w2 = jax.random.normal(k_w2, (OUT, HID), dtype=jnp.float32) * 0.1
    b2 = jax.random.normal(k_b2, (OUT,), dtype=jnp.float32) * 0.1

    # One-time param prep (layer folding), outside the forward path.
    w_folded, b_folded = prepare_params(w1, b1, w2, b2)

    out = two_linear_forward(x, w_folded, b_folded)
    out = jax.block_until_ready(out)

    # Reference: same semantics as PyTorch Net.forward (two chained nn.Linear).
    ref = (x @ w1.T + b1) @ w2.T + b2
    assert out.shape == (B, OUT), out.shape
    assert jnp.allclose(out, ref, atol=1e-4, rtol=1e-4), float(jnp.max(jnp.abs(out - ref)))

    print("KERNEL_OK")
</pallas_src>

<mosaic_0001>
module attributes {stable_mosaic.version = 11 : i64} {
  func.func @fused_linear_kernel(%arg0: i32, %arg1: memref<8x30xf32, #tpu.memory_space<vmem>>, %arg2: memref<30x10xf32, #tpu.memory_space<vmem>>, %arg3: memref<1x10xf32, #tpu.memory_space<vmem>>, %arg4: memref<8x10xf32, #tpu.memory_space<vmem>>) attributes {dimension_semantics = [#tpu.dimension_semantics<parallel>], iteration_bounds = array<i64: 1>, scalar_prefetch = 0 : i64, scratch_operands = 0 : i64, tpu.core_type = #tpu.core_type<tc>, window_params = [{transform_indices = @transform_0, window_bounds = array<i64: 8, 30>}, {pipeline_mode = #tpu.pipeline_mode<synchronous>, transform_indices = @transform_1, window_bounds = array<i64: 30, 10>}, {pipeline_mode = #tpu.pipeline_mode<synchronous>, transform_indices = @transform_2, window_bounds = array<i64: 1, 10>}, {transform_indices = @transform_3, window_bounds = array<i64: 8, 10>}]} {
    %c0 = arith.constant 0 : index
    %c0_0 = arith.constant 0 : index
    %0 = vector.load %arg1[%c0, %c0_0] : memref<8x30xf32, #tpu.memory_space<vmem>>, vector<8x30xf32>
    %c0_1 = arith.constant 0 : index
    %c0_2 = arith.constant 0 : index
    %1 = vector.load %arg2[%c0_1, %c0_2] : memref<30x10xf32, #tpu.memory_space<vmem>>, vector<30x10xf32>
    %cst = arith.constant dense<0.000000e+00> : vector<8x10xf32>
    %2 = tpu.matmul %0, %1, %cst {dimension_numbers = #tpu.dot_dimension_numbers<[1], [0], [0], [1], [0, 0, 1, 1], [], []>} : vector<8x30xf32>, vector<30x10xf32>, vector<8x10xf32> -> vector<8x10xf32>
    %c0_3 = arith.constant 0 : index
    %c0_4 = arith.constant 0 : index
    %3 = vector.load %arg3[%c0_3, %c0_4] : memref<1x10xf32, #tpu.memory_space<vmem>>, vector<1x10xf32>
    %4 = vector.broadcast %3 : vector<1x10xf32> to vector<8x10xf32>
    %5 = arith.addf %2, %4 : vector<8x10xf32>
    %c0_5 = arith.constant 0 : index
    %c0_6 = arith.constant 0 : index
    %6 = vector.load %arg4[%c0_5, %c0_6] : memref<8x10xf32, #tpu.memory_space<vmem>>, vector<8x10xf32>
    tpu.vector_store %arg4[%c0_5, %c0_6], %5 {strides = array<i32>} : memref<8x10xf32, #tpu.memory_space<vmem>>, vector<8x10xf32>,
    return
  }
  func.func @transform_0(%arg0: i32) -> (i32, i32) {
    %c0_i32 = arith.constant 0 : i32
    %c0_i32_0 = arith.constant 0 : i32
    return %arg0, %c0_i32 : i32, i32
  }
  func.func @transform_1(%arg0: i32) -> (i32, i32) {
    %c0_i32 = arith.constant 0 : i32
    %c0_i32_0 = arith.constant 0 : i32
    %c0_i32_1 = arith.constant 0 : i32
    return %c0_i32, %c0_i32_0 : i32, i32
  }
  func.func @transform_2(%arg0: i32) -> (i32, i32) {
    %c0_i32 = arith.constant 0 : i32
    %c0_i32_0 = arith.constant 0 : i32
    %c0_i32_1 = arith.constant 0 : i32
    return %c0_i32, %c0_i32_0 : i32, i32
  }
  func.func @transform_3(%arg0: i32) -> (i32, i32) {
    %c0_i32 = arith.constant 0 : i32
    %c0_i32_0 = arith.constant 0 : i32
    return %arg0, %c0_i32 : i32, i32
  }
}

</mosaic_0001>

<bundles_post_ra>
// kernel: tpu_custom_call.1
= control target key start
LH: loop header
LB: loop body
LE: loop exit
PB: predicated region body
PF: predicated region fallthrough
CT: control target
= control target key end

     0   :  { %vm31_vm0 = vcmask 1045504   ;;  %v165_v1 = vmov 0.0   ;;  %vm166_vm1 = vmmov 0   ;;  %s209_s0 = inlined_call_operand.vmem [shape: f32[8,30], index: 0, kind: input, shape index: {}]   ;;  %s210_s1 = inlined_call_operand.vmem [shape: f32[30,10], index: 1, kind: input, shape index: {}]   ;;  %s211_s2 = inlined_call_operand.vmem [shape: f32[1,10], index: 2, kind: input, shape index: {}]   ;;  %s212_s3 = inlined_call_operand.hbm [shape: f32[8,10], index: 3, kind: output, shape index: {}]  }
   0x1   :  { %v19_v0 = vld [vmem:[%s210_s1 + $0x18] sm:$0x3f]  ;;  %129 = vmatprep.subr.mxu0 %v165_v1  ;;  %v18_v2 = vld [vmem:[%s210_s1 + $0x10] sm:$0xff]  ;;  %137 = vmatprep.mubr.msk.f32.mxu0 %vm166_vm1, %v165_v1 }
   0x2   :  { %130 = vmatpush3.msk.msra.mxu0 %vm31_vm0, %v19_v0 }
   0x3   :  { %8 = vsyncpa [#allocation3], 0  ;;  %131 = vmatprep.subr.mxu0 %v165_v1  ;;  %v17_v3 = vld [vmem:[%s210_s1 + $0x8] sm:$0xff]  ;;  %v16_v4 = vld [vmem:[%s210_s1] sm:$0xff]  ;;  %vm27_vm2 = vcmask 244736   ;;  %s167_s24 = smov [#allocation2]  }
   0x4   :  { %132 = vmatpush3.msra.mxu0 %v18_v2  ;;  %v15_v5 = vld [vmem:[%s209_s0] sm:$0xff]  ;;  %s113_s25 = sshll.u32 %s167_s24, 4  ;;  %vm105_vm3 = vcmask 80896   ;;  %s114_s25 = int_to_ptr.vmem [resolvable:$true] %s113_s25 }
   0x5   :  { %133 = vmatprep.subr.mxu0 %v165_v1  ;;  %v121_v6 = vld [vmem:[%s211_s2] ss:$0 sm:$0xff]  ;;  %s143_s1 = scalar_lea.vmem %s114_s25, 128  ;;  %p148_p1 = scmp.lt.s32.totalorder %s114_s25, %s114_s25 }
   0x6   :  { %134 = vmatpush3.msra.mxu0 %v17_v3  ;;  %p144_p0 = scmp.ne.s32.totalorder %s114_s25, %s143_s1  ;;  %p149_p2 = scmp.lt.s32.totalorder %s143_s1, %s143_s1 }
   0x7   :  { %135 = vmatprep.subr.mxu0 %v165_v1 }
   0x8   :  { %136 = vmatpush3.msra.mxu0 %v16_v4  ;;  %p150_p3 = por %p149_p2, %p148_p1 }
   0x9   :  { %138 = vmatmul.mubr.msk.f32.vlgmr.msra.gmra.mxu0 %vm27_vm2, %v15_v5 }
   0xa   :  { %p151_p4 = pnand %p150_p3, %p144_p0 }
  0xc9   :  { %v101_v7 = vpop.f32.mrf.mxu0 }
  0xca   :  { %v102_v8 = vadd.f32 %v121_v6, %v101_v7 }
  0xcb   :  { %v139_v9 = vpop.f32.mrf.mxu0 }
  0xcc   :  { %106 = vst.msk [vmem:[#allocation2] sm:$0xff] %vm105_vm3, %v102_v8 }
  0xcd   :  { %154 = shalt.err (!%p151_p4)
}
  0xce   :  { %116 = dma.vmem_to_hbm [thread:$0]  %s114_s25, 128, %s212_s3, [#allocation3]  }
  0xcf   :  { %163 = dma.done.wait [#allocation3], 128  }
  0xd0   :  { %164 = vsyncadd [#allocation3], 4294967168 }
  0xd1   :  { %120 = vsyncpa [#allocation3], 1 }

</bundles_post_ra>
